<compile_context>
chip_gen: v7x
topology: tpu7x:2x2x1
jax: 0.10.0
libtpu: 0.0.40
codegen_flags: <defaults>
</compile_context>

<pallas_src>
import functools

import jax
import jax.numpy as jnp
from jax.experimental import pallas as pl
from jax.experimental.pallas import tpu as pltpu

INPUT_DIM = 10
HIDDEN_DIM = 64
OUTPUT_DIM = 10


def rnn_kernel(x_ref, wih_ref, whh_ref, b_ref, wfc_ref, bfc_ref,
               out_ref, xproj_ref, h_ref, *, t_chunk, batch):
    """One time-chunk of the Elman recurrence (+ final FC on the last chunk).

    x_ref:     (T_CHUNK*B_pad, D_in)  time-major chunk, batch padded to 8
    wih_ref:   (D_in, H)   whh_ref: (H, H)   b_ref: (1, H)  (= b_ih + b_hh)
    wfc_ref:   (H, D_out_pad)   bfc_ref: (1, D_out_pad)
    out_ref:   (B_pad, D_out_pad)                 written on the last chunk only
    xproj_ref: (T_CHUNK*B_pad, H) VMEM scratch    per-chunk input projection
    h_ref:     (B_pad, H)         VMEM scratch    hidden state, persists chunks
    """
    c = pl.program_id(0)
    last = pl.num_programs(0) - 1

    # h0 = 0 (PyTorch passes zeros); only on the very first chunk.
    @pl.when(c == 0)
    def _():
        h_ref[...] = jnp.zeros_like(h_ref)

    # Hoisted input projection for the whole chunk: one batched matmul, bias
    # broadcast once.  Lives in VMEM scratch so per-step reads are plain vlds
    # off the serial h-dependency chain (bounded vreg pressure for any T_CHUNK).
    xproj_ref[...] = (
        jnp.dot(x_ref[...], wih_ref[...], preferred_element_type=jnp.float32)
        + b_ref[...]
    )

    whh = whh_ref[...]          # (H, H), resident across the chunk
    h = h_ref[...]              # carried in vregs within the chunk

    # Static (fully visible) step loop; every slice start is a static multiple
    # of B_pad (itself a multiple of 8), so loads are sublane-aligned.
    for t in range(t_chunk):
        xt = xproj_ref[t * batch:(t + 1) * batch, :]
        # TODO(synk): replace with pltpu.matmul_push_rhs (once) +
        # matmul_acc_lhs / matmul_pop per step to keep W_hh staged in the MXU.
        h = jnp.tanh(xt + jnp.dot(h, whh, preferred_element_type=jnp.float32))

    h_ref[...] = h              # one vst per chunk

    # Final FC fused on the live register value of the last hidden state.
    # Output is lane-dense (D_out padded to 128) -> unmasked stores.
    @pl.when(c == last)
    def _():
        out_ref[...] = (
            jnp.dot(h, wfc_ref[...], preferred_element_type=jnp.float32)
            + bfc_ref[...]
        )


def _pick_time_chunk(T, target):
    """Largest divisor of T that is <= target (so no time-padding is needed)."""
    if T <= target:
        return T
    for c in range(target, 0, -1):
        if T % c == 0:
            return c
    return 1


def _vmem_estimate_bytes(t_chunk, b_pad, n_pad):
    """Rough per-buffer VMEM need (lane dim pads to 128), plus headroom."""
    lane = 128
    xin = 2 * t_chunk * b_pad * lane * 4      # double-buffered input chunk
    xproj = t_chunk * b_pad * lane * 4        # projection scratch (H=64 -> 1 tile)
    h = b_pad * lane * 4                      # persistent hidden state
    out = 2 * b_pad * n_pad * 4               # output block (double-buffered)
    weights = (lane * lane + 2 * lane * n_pad + 2 * lane) * 4
    return xin + xproj + h + out + weights + (4 << 20)


def rnn_model_forward(x_btd, w_ih, w_hh, b_ih, b_hh, w_fc, b_fc,
                      *, t_chunk_target=32):
    """x_btd: (B, T, D_in) float32 — PyTorch batch_first convention."""
    B, T, D_in = x_btd.shape
    H = w_hh.shape[0]
    D_out = w_fc.shape[0]

    # --- static layout glue in plain JAX ---
    B_pad = ((B + 7) // 8) * 8                 # sublane-align each timestep block
    N_pad = ((D_out + 127) // 128) * 128       # lane-dense FC output
    T_CHUNK = _pick_time_chunk(T, t_chunk_target)
    n_chunks = T // T_CHUNK

    x_tbd = jnp.transpose(x_btd, (1, 0, 2))                       # (T, B, D_in)
    x_tbd = jnp.pad(x_tbd, ((0, 0), (0, B_pad - B), (0, 0)))      # (T, B_pad, D_in)
    x2d = x_tbd.reshape(T * B_pad, D_in)                          # (T*B_pad, D_in)

    wih_t = w_ih.T                                                # (D_in, H)
    whh_t = w_hh.T                                                # (H, H)
    b_rnn = (b_ih + b_hh).reshape(1, H)                           # (1, H)
    wfc_t = jnp.pad(w_fc.T, ((0, 0), (0, N_pad - D_out)))         # (H, N_pad)
    bfc = jnp.pad(b_fc, (0, N_pad - D_out)).reshape(1, N_pad)     # (1, N_pad)

    kernel = functools.partial(rnn_kernel, t_chunk=T_CHUNK, batch=B_pad)

    grid_spec = pltpu.PrefetchScalarGridSpec(
        num_scalar_prefetch=0,
        grid=(n_chunks,),
        in_specs=[
            # streamed per-chunk (double-buffered by the Pallas pipeline)
            pl.BlockSpec((T_CHUNK * B_pad, D_in), lambda c: (c, 0)),
            # weights / biases: constant block index -> loaded once, resident
            pl.BlockSpec((D_in, H), lambda c: (0, 0)),
            pl.BlockSpec((H, H), lambda c: (0, 0)),
            pl.BlockSpec((1, H), lambda c: (0, 0)),
            pl.BlockSpec((H, N_pad), lambda c: (0, 0)),
            pl.BlockSpec((1, N_pad), lambda c: (0, 0)),
        ],
        out_specs=pl.BlockSpec((B_pad, N_pad), lambda c: (0, 0)),
        scratch_shapes=[
            pltpu.VMEM((T_CHUNK * B_pad, H), jnp.float32),   # xproj chunk
            pltpu.VMEM((B_pad, H), jnp.float32),             # persistent h
        ],
    )

    cp_kwargs = dict(dimension_semantics=("arbitrary",))   # time is sequential
    est = _vmem_estimate_bytes(T_CHUNK, B_pad, N_pad)
    if est > (32 << 20):                                    # above scoped default
        cp_kwargs["vmem_limit_bytes"] = int(est)

    out_pad = pl.pallas_call(
        kernel,
        out_shape=jax.ShapeDtypeStruct((B_pad, N_pad), jnp.float32),
        grid_spec=grid_spec,
        compiler_params=pltpu.CompilerParams(**cp_kwargs),
    )(x2d, wih_t, whh_t, b_rnn, wfc_t, bfc)

    # Slice the real batch rows / output columns back out.
    return out_pad[:B, :D_out]


def rnn_model_reference(x_btd, w_ih, w_hh, b_ih, b_hh, w_fc, b_fc):
    """Pure-JAX reference matching PyTorch nn.RNN(tanh) + Linear semantics."""
    B, T, _ = x_btd.shape
    h = jnp.zeros((B, w_hh.shape[0]), jnp.float32)
    for t in range(T):
        h = jnp.tanh(x_btd[:, t, :] @ w_ih.T + b_ih + h @ w_hh.T + b_hh)
    return h @ w_fc.T + b_fc


if __name__ == "__main__":
    key = jax.random.PRNGKey(0)
    k_x, k1, k2, k3, k4, k5, k6 = jax.random.split(key, 7)

    B, T = 4, 8
    scale = 1.0 / jnp.sqrt(HIDDEN_DIM)

    x = jax.random.normal(k_x, (B, T, INPUT_DIM), jnp.float32)

    # Parameter shapes follow nn.RNN / nn.Linear __init__.
    w_ih = jax.random.uniform(k1, (HIDDEN_DIM, INPUT_DIM), jnp.float32, -scale, scale)
    w_hh = jax.random.uniform(k2, (HIDDEN_DIM, HIDDEN_DIM), jnp.float32, -scale, scale)
    b_ih = jax.random.uniform(k3, (HIDDEN_DIM,), jnp.float32, -scale, scale)
    b_hh = jax.random.uniform(k4, (HIDDEN_DIM,), jnp.float32, -scale, scale)
    w_fc = jax.random.uniform(k5, (OUTPUT_DIM, HIDDEN_DIM), jnp.float32, -scale, scale)
    b_fc = jax.random.uniform(k6, (OUTPUT_DIM,), jnp.float32, -scale, scale)

    # t_chunk_target=4 -> grid of 2 time chunks, exercising the persistent-h
    # scratch, the pl.when(first) init and the pl.when(last) FC/store paths.
    out = rnn_model_forward(x, w_ih, w_hh, b_ih, b_hh, w_fc, b_fc,
                            t_chunk_target=4)
    out = jax.block_until_ready(out)

    ref = rnn_model_reference(x, w_ih, w_hh, b_ih, b_hh, w_fc, b_fc)
    assert out.shape == (B, OUTPUT_DIM)
    assert jnp.allclose(out, ref, atol=1e-5, rtol=1e-5), "mismatch vs JAX reference"

    print("KERNEL_OK")
</pallas_src>

<mosaic_0001>
module attributes {stable_mosaic.version = 11 : i64} {
  func.func @rnn_kernel(%arg0: i32, %arg1: memref<32x10xf32, #tpu.memory_space<vmem>>, %arg2: memref<10x64xf32, #tpu.memory_space<vmem>>, %arg3: memref<64x64xf32, #tpu.memory_space<vmem>>, %arg4: memref<1x64xf32, #tpu.memory_space<vmem>>, %arg5: memref<64x128xf32, #tpu.memory_space<vmem>>, %arg6: memref<1x128xf32, #tpu.memory_space<vmem>>, %arg7: memref<8x128xf32, #tpu.memory_space<vmem>>, %arg8: memref<32x64xf32, #tpu.memory_space<vmem>>, %arg9: memref<8x64xf32, #tpu.memory_space<vmem>>) attributes {dimension_semantics = [#tpu.dimension_semantics<arbitrary>], iteration_bounds = array<i64: 2>, scalar_prefetch = 0 : i64, scratch_operands = 2 : i64, tpu.core_type = #tpu.core_type<tc>, window_params = [{transform_indices = @transform_0, window_bounds = array<i64: 32, 10>}, {pipeline_mode = #tpu.pipeline_mode<synchronous>, transform_indices = @transform_1, window_bounds = array<i64: 10, 64>}, {pipeline_mode = #tpu.pipeline_mode<synchronous>, transform_indices = @transform_2, window_bounds = array<i64: 64, 64>}, {pipeline_mode = #tpu.pipeline_mode<synchronous>, transform_indices = @transform_3, window_bounds = array<i64: 1, 64>}, {pipeline_mode = #tpu.pipeline_mode<synchronous>, transform_indices = @transform_4, window_bounds = array<i64: 64, 128>}, {pipeline_mode = #tpu.pipeline_mode<synchronous>, transform_indices = @transform_5, window_bounds = array<i64: 1, 128>}, {pipeline_mode = #tpu.pipeline_mode<synchronous>, transform_indices = @transform_6, window_bounds = array<i64: 8, 128>}]} {
    %c0_i32 = arith.constant 0 : i32
    %0 = arith.cmpi eq, %arg0, %c0_i32 : i32
    %1 = arith.extui %0 : i1 to i32
    %c0_i32_0 = arith.constant 0 : i32
    %2 = arith.cmpi ne, %1, %c0_i32_0 : i32
    scf.if %2 {
      %cst_24 = arith.constant 0.000000e+00 : f32
      %32 = vector.broadcast %cst_24 : f32 to vector<8x64xf32>
      %c0_25 = arith.constant 0 : index
      %c0_26 = arith.constant 0 : index
      %33 = vector.load %arg9[%c0_25, %c0_26] : memref<8x64xf32, #tpu.memory_space<vmem>>, vector<8x64xf32>
      tpu.vector_store %arg9[%c0_25, %c0_26], %32 {strides = array<i32>} : memref<8x64xf32, #tpu.memory_space<vmem>>, vector<8x64xf32>,
    } else {
    }
    %c0 = arith.constant 0 : index
    %c0_1 = arith.constant 0 : index
    %3 = vector.load %arg1[%c0, %c0_1] : memref<32x10xf32, #tpu.memory_space<vmem>>, vector<32x10xf32>
    %c0_2 = arith.constant 0 : index
    %c0_3 = arith.constant 0 : index
    %4 = vector.load %arg2[%c0_2, %c0_3] : memref<10x64xf32, #tpu.memory_space<vmem>>, vector<10x64xf32>
    %cst = arith.constant dense<0.000000e+00> : vector<32x64xf32>
    %5 = tpu.matmul %3, %4, %cst {dimension_numbers = #tpu.dot_dimension_numbers<[1], [0], [0], [1], [0, 0, 1, 1], [], []>} : vector<32x10xf32>, vector<10x64xf32>, vector<32x64xf32> -> vector<32x64xf32>
    %c0_4 = arith.constant 0 : index
    %c0_5 = arith.constant 0 : index
    %6 = vector.load %arg4[%c0_4, %c0_5] : memref<1x64xf32, #tpu.memory_space<vmem>>, vector<1x64xf32>
    %7 = vector.broadcast %6 : vector<1x64xf32> to vector<32x64xf32>
    %8 = arith.addf %5, %7 : vector<32x64xf32>
    %c0_6 = arith.constant 0 : index
    %c0_7 = arith.constant 0 : index
    %9 = vector.load %arg8[%c0_6, %c0_7] : memref<32x64xf32, #tpu.memory_space<vmem>>, vector<32x64xf32>
    tpu.vector_store %arg8[%c0_6, %c0_7], %8 {strides = array<i32>} : memref<32x64xf32, #tpu.memory_space<vmem>>, vector<32x64xf32>,
    %c0_8 = arith.constant 0 : index
    %c0_9 = arith.constant 0 : index
    %10 = vector.load %arg3[%c0_8, %c0_9] : memref<64x64xf32, #tpu.memory_space<vmem>>, vector<64x64xf32>
    %c0_10 = arith.constant 0 : index
    %c0_11 = arith.constant 0 : index
    %11 = vector.load %arg9[%c0_10, %c0_11] : memref<8x64xf32, #tpu.memory_space<vmem>>, vector<8x64xf32>
    %c0_12 = arith.constant 0 : index
    %c0_13 = arith.constant 0 : index
    %12 = vector.load %arg8[%c0_12, %c0_13] : memref<32x64xf32, #tpu.memory_space<vmem>>, vector<8x64xf32>
    %cst_14 = arith.constant dense<0.000000e+00> : vector<8x64xf32>
    %13 = tpu.matmul %11, %10, %cst_14 {dimension_numbers = #tpu.dot_dimension_numbers<[1], [0], [0], [1], [0, 0, 1, 1], [], []>} : vector<8x64xf32>, vector<64x64xf32>, vector<8x64xf32> -> vector<8x64xf32>
    %14 = arith.addf %12, %13 : vector<8x64xf32>
    %15 = math.tanh %14 : vector<8x64xf32>
    %c8 = arith.constant 8 : index
    %c0_15 = arith.constant 0 : index
    %16 = vector.load %arg8[%c8, %c0_15] : memref<32x64xf32, #tpu.memory_space<vmem>>, vector<8x64xf32>
    %cst_16 = arith.constant dense<0.000000e+00> : vector<8x64xf32>
    %17 = tpu.matmul %15, %10, %cst_16 {dimension_numbers = #tpu.dot_dimension_numbers<[1], [0], [0], [1], [0, 0, 1, 1], [], []>} : vector<8x64xf32>, vector<64x64xf32>, vector<8x64xf32> -> vector<8x64xf32>
    %18 = arith.addf %16, %17 : vector<8x64xf32>
    %19 = math.tanh %18 : vector<8x64xf32>
    %c16 = arith.constant 16 : index
    %c0_17 = arith.constant 0 : index
    %20 = vector.load %arg8[%c16, %c0_17] : memref<32x64xf32, #tpu.memory_space<vmem>>, vector<8x64xf32>
    %cst_18 = arith.constant dense<0.000000e+00> : vector<8x64xf32>
    %21 = tpu.matmul %19, %10, %cst_18 {dimension_numbers = #tpu.dot_dimension_numbers<[1], [0], [0], [1], [0, 0, 1, 1], [], []>} : vector<8x64xf32>, vector<64x64xf32>, vector<8x64xf32> -> vector<8x64xf32>
    %22 = arith.addf %20, %21 : vector<8x64xf32>
    %23 = math.tanh %22 : vector<8x64xf32>
    %c24 = arith.constant 24 : index
    %c0_19 = arith.constant 0 : index
    %24 = vector.load %arg8[%c24, %c0_19] : memref<32x64xf32, #tpu.memory_space<vmem>>, vector<8x64xf32>
    %cst_20 = arith.constant dense<0.000000e+00> : vector<8x64xf32>
    %25 = tpu.matmul %23, %10, %cst_20 {dimension_numbers = #tpu.dot_dimension_numbers<[1], [0], [0], [1], [0, 0, 1, 1], [], []>} : vector<8x64xf32>, vector<64x64xf32>, vector<8x64xf32> -> vector<8x64xf32>
    %26 = arith.addf %24, %25 : vector<8x64xf32>
    %27 = math.tanh %26 : vector<8x64xf32>
    %c0_21 = arith.constant 0 : index
    %c0_22 = arith.constant 0 : index
    %28 = vector.load %arg9[%c0_21, %c0_22] : memref<8x64xf32, #tpu.memory_space<vmem>>, vector<8x64xf32>
    tpu.vector_store %arg9[%c0_21, %c0_22], %27 {strides = array<i32>} : memref<8x64xf32, #tpu.memory_space<vmem>>, vector<8x64xf32>,
    %c1_i32 = arith.constant 1 : i32
    %29 = arith.cmpi eq, %arg0, %c1_i32 : i32
    %30 = arith.extui %29 : i1 to i32
    %c0_i32_23 = arith.constant 0 : i32
    %31 = arith.cmpi ne, %30, %c0_i32_23 : i32
    scf.if %31 {
      %c0_24 = arith.constant 0 : index
      %c0_25 = arith.constant 0 : index
      %32 = vector.load %arg5[%c0_24, %c0_25] : memref<64x128xf32, #tpu.memory_space<vmem>>, vector<64x128xf32>
      %cst_26 = arith.constant dense<0.000000e+00> : vector<8x128xf32>
      %33 = tpu.matmul %27, %32, %cst_26 {dimension_numbers = #tpu.dot_dimension_numbers<[1], [0], [0], [1], [0, 0, 1, 1], [], []>} : vector<8x64xf32>, vector<64x128xf32>, vector<8x128xf32> -> vector<8x128xf32>
      %c0_27 = arith.constant 0 : index
      %c0_28 = arith.constant 0 : index
      %34 = vector.load %arg6[%c0_27, %c0_28] : memref<1x128xf32, #tpu.memory_space<vmem>>, vector<1x128xf32>
      %35 = vector.broadcast %34 : vector<1x128xf32> to vector<8x128xf32>
      %36 = arith.addf %33, %35 : vector<8x128xf32>
      %c0_29 = arith.constant 0 : index
      %c0_30 = arith.constant 0 : index
      %37 = vector.load %arg7[%c0_29, %c0_30] : memref<8x128xf32, #tpu.memory_space<vmem>>, vector<8x128xf32>
      tpu.vector_store %arg7[%c0_29, %c0_30], %36 {strides = array<i32>} : memref<8x128xf32, #tpu.memory_space<vmem>>, vector<8x128xf32>,
    } else {
    }
    return
  }
  func.func @transform_0(%arg0: i32) -> (i32, i32) {
    %c0_i32 = arith.constant 0 : i32
    %c0_i32_0 = arith.constant 0 : i32
    return %arg0, %c0_i32 : i32, i32
  }
  func.func @transform_1(%arg0: i32) -> (i32, i32) {
    %c0_i32 = arith.constant 0 : i32
    %c0_i32_0 = arith.constant 0 : i32
    %c0_i32_1 = arith.constant 0 : i32
    return %c0_i32, %c0_i32_0 : i32, i32
  }
  func.func @transform_2(%arg0: i32) -> (i32, i32) {
    %c0_i32 = arith.constant 0 : i32
    %c0_i32_0 = arith.constant 0 : i32
    %c0_i32_1 = arith.constant 0 : i32
    return %c0_i32, %c0_i32_0 : i32, i32
  }
  func.func @transform_3(%arg0: i32) -> (i32, i32) {
    %c0_i32 = arith.constant 0 : i32
    %c0_i32_0 = arith.constant 0 : i32
    %c0_i32_1 = arith.constant 0 : i32
    return %c0_i32, %c0_i32_0 : i32, i32
  }
  func.func @transform_4(%arg0: i32) -> (i32, i32) {
    %c0_i32 = arith.constant 0 : i32
    %c0_i32_0 = arith.constant 0 : i32
    %c0_i32_1 = arith.constant 0 : i32
    return %c0_i32, %c0_i32_0 : i32, i32
  }
  func.func @transform_5(%arg0: i32) -> (i32, i32) {
    %c0_i32 = arith.constant 0 : i32
    %c0_i32_0 = arith.constant 0 : i32
    %c0_i32_1 = arith.constant 0 : i32
    return %c0_i32, %c0_i32_0 : i32, i32
  }
  func.func @transform_6(%arg0: i32) -> (i32, i32) {
    %c0_i32 = arith.constant 0 : i32
    %c0_i32_0 = arith.constant 0 : i32
    %c0_i32_1 = arith.constant 0 : i32
    return %c0_i32, %c0_i32_0 : i32, i32
  }
}

</mosaic_0001>

<bundles_post_ra>
// kernel: tpu_custom_call.1
= control target key start
LH: loop header
LB: loop body
LE: loop exit
PB: predicated region body
PF: predicated region fallthrough
CT: control target
= control target key end

     0   :  { %11 = vsyncpa [#allocation5], 0  ;;  %s1420_s0 = inlined_call_operand.vmem [shape: f32[64,10], index: 0, kind: input, shape index: {}]   ;;  %s1421_s1 = inlined_call_operand.vmem [shape: f32[10,64], index: 1, kind: input, shape index: {}]   ;;  %s1422_s2 = inlined_call_operand.vmem [shape: f32[64,64], index: 2, kind: input, shape index: {}]   ;;  %s1423_s3 = inlined_call_operand.vmem [shape: f32[1,64], index: 3, kind: input, shape index: {}]   ;;  %s1424_s4 = inlined_call_operand.hbm [shape: f32[64,128], index: 4, kind: input, shape index: {}]   ;;  %s1425_s5 = inlined_call_operand.vmem [shape: f32[1,128], index: 5, kind: input, shape index: {}]   ;;  %s1426_s6 = inlined_call_operand.hbm [shape: f32[8,128], index: 6, kind: output, shape index: {}]  }
   0x1   :  { %12 = vsyncpa [#allocation6], 0  ;;  %s1255_s21 = smov 0  }
   0x2 LB: > { %s1261_s22 = sadd.s32 4294967295, %s1206_s21   ;;  %p847_p0 = scmp.ge.s32.totalorder %s1206_s21, 1  ;;  %s1206_s21 = sphi %s1255_s21, %s18_s21  }
   0x3   : > { %p175_p1 = scmp.lt.s32.totalorder %s1206_s21, 3  ;;  %s1208_s23 = smov [#allocation4]  }
   0x4   : > { %s196_s24 = sshll.u32 %s1208_s23, 4  ;;  %p1427_p4 = scmp.eq.s32.totalorder %s1261_s22, 0  ;;  %s197_s24 = int_to_ptr.vmem [resolvable:$true] %s196_s24 }
   0x5   : > { %p1266_p3 = pnand %p847_p0, %p175_p1  ;;  %s1138_s29 = scalar_lea.hbm %s1424_s4, 1024 }
   0x6   : > { %p1139_p7 = scmp.ne.s32.totalorder %s1424_s4, %s1138_s29  ;;  %p1145_p11 = scmp.lt.u32.totalorder %s1138_s29, %s1424_s4 }
   0x7   : > { %s1429_s25 = scalar_select %p1266_p3, 1, 0 }
   0x8   : > { %p1102_p5 = pneg %p1266_p3 }
   0xa   : > { %p1275_p6 = pnand %p1427_p4, %p1102_p5 }
   0xc   : > { %p1140_p8 = pneg %p1275_p6 }
   0xe   : > { %p1141_p9 = pnand %p1140_p8, %p1139_p7 }
  0x10   : > { %p1142_p10 = pneg %p1141_p9 }
  0x12   : > { %p1147_p12 = pnand %p1145_p11, %p1142_p10 }
  0x14   : > { %1150 = shalt.err (!%p1147_p12)
}
  0x15   : > { %s1151_s10 = scalar_lea.vmem %s197_s24, 1024  ;;  %p1159_p5 = scmp.lt.s32.totalorder %s197_s24, %s197_s24 }
  0x16   : > { %p1152_p13 = scmp.ne.s32.totalorder %s197_s24, %s1151_s10  ;;  %p1160_p2 = scmp.lt.s32.totalorder %s1151_s10, %s1151_s10 }
  0x18   : > { %p1154_p0 = pnand %p1152_p13, %p1140_p8  ;;  %p1161_p4 = por %p1160_p2, %p1159_p5 }
  0x1a   : > { %p1155_p1 = pneg %p1154_p0 }
  0x1c   : > { %p1162_p3 = pnand %p1161_p4, %p1155_p1 }
  0x1e   : > { %1165 = shalt.err (!%p1162_p3)
}
  0x1f   : > { %s1209_s11 = smov 128   ;;  %s1210_s12 = smov 8  }
  0x20   : > { %1105 = dma.hbm_to_vmem [thread:$0]  (!%p1275_p6), %s1424_s4, 1024, %s197_s24, [#allocation5], %s1209_s11, %s1209_s11, %s1210_s12  }
  0x21   : > { %p1431_p7 = scmp.ne.s32.totalorder %s1429_s25, 0 }
  0x22   : > { %p1432_p9 = scmp.eq.s32.totalorder (!%p1431_p7), %s1261_s22, 0 }
  0x23   : > { %224 = sbr.rel (%p1431_p7) target bundleno = 1211 (0x4bb), region = 44 }
  0x2a   : > { %1197 = dma.done.wait (%p1432_p9), [#allocation5], 1024   ;;  %p1433_p8 = pmov %p1432_p9 }
  0x2b   : > { %s852_s15 = sshll.u32 %s1261_s22, 2  ;;  %p1434_p3 = scmp.ne.s32.totalorder %s1261_s22, 0 }
  0x2c   : > { %1199 = vsyncadd (%p1433_p8), [#allocation5], 4294966272  ;;  %p250_p2 = scmp.lt.s32.totalorder %s852_s15, 7  ;;  %vm259_vm0 = vcmask (!%p1434_p3), 523264   ;;  %v1211_v0 = vmov (!%p1434_p3), 0.0  }
  0x2d   : > { %258 = sbr.rel (%p1434_p3) target bundleno = 52 (0x34), region = 52  ;;  %260 = vst.msk [vmem:[#allocation3] sm:$0xff] (!%p1434_p3), %vm259_vm0, %v1211_v0 }
  0x2e   : > { %s1436_s15 = smov (!%p250_p2, %s852_s15), 7 }
  0x2f   : > { %s853_s16 = sshll.u32 %s1436_s15, 3 }
  0x30   : > { %s1305_s19 = scalar_lea.vmem %s1420_s0, %s853_s16 }
  0x34 PF: > { %v265_v1 = vld [vmem:[%s1421_s1] sm:$0xff]  ;;  %v266_v2 = vld [vmem:[%s1421_s1 + $0x8] sm:$0x3]  ;;  %vm287_vm1 = vcmask 1041408   ;;  %v1212_v3 = vmov 0.0|0.0   ;;  %vm1213_vm2 = vmmov 1  }
  0x35   : > { %1034 = vmatprep.subr.bf16.mxu1 %v1212_v3  ;;  %v1028_v4 = vpack.c.bf16 %v266_v2, %v265_v1  ;;  %vm1029_vm3 = vmpackc.low %vm287_vm1, %vm1213_vm2  ;;  %v381_v5 = vld [vmem:[%s1422_s2] sm:$0xff]  ;;  %v382_v6 = vld [vmem:[%s1422_s2 + $0x8] sm:$0xff]  ;;  %vm274_vm4 = vcmask 80896   ;;  %vm1214_vm5 = vmmov 0   ;;  %v1215_v10 = vmov 0.0   ;;  %p865_p4 = scmp.ne.s32.totalorder %s1261_s22, 1 }
  0x36   : > { %v1322_v7 = vpack.c.bf16 %v382_v6, %v381_v5  ;;  %v261_v8 = vld [vmem:[%s1305_s19] sm:$0xff]  ;;  %v383_v9 = vld [vmem:[%s1422_s2 + $0x10] sm:$0xff]  ;;  %949 = vmatprep.mubr.msk.f32.mxu1 %vm1214_vm5, %v1215_v10  ;;  %v384_v11 = vld [vmem:[%s1422_s2 + $0x18] sm:$0xff]  ;;  %vm376_vm6 = vcmask 523264   ;;  %v1216_v55 = vmov (!%p865_p4), 0.0|0.0   ;;  %vm1217_vm7 = vmmov (!%p865_p4), 0  }
  0x37   : > { %1030 = vmatprep.subr.msk.bf16.mxu0 %vm1029_vm3, %v1028_v4  ;;  %927 = vmatprep.mubr.msk.f32.mxu0 %vm274_vm4, %v261_v8  ;;  %v262_v12 = vld [vmem:[%s1305_s19 + $0x8] sm:$0xff]  ;;  %v1038_v13 = vpack.c.bf16 %v384_v11, %v383_v9  ;;  %v385_v14 = vld [vmem:[%s1422_s2 + $0x20] sm:$0xff]  ;;  %v387_v17 = vld [vmem:[%s1422_s2 + $0x30] sm:$0xff]  ;;  %v1218_v58 = vmov (!%p865_p4), 0.0  }
  0x38   : > { %1036 = vmatpush3.bf16.msra.mxu1 %v1322_v7  ;;  %1033 = vmatpush3.bf16.msk.msra.mxu0 %vm1029_vm3, %v1028_v4  ;;  %v386_v15 = vld [vmem:[%s1422_s2 + $0x28] sm:$0xff]  ;;  %v388_v18 = vld [vmem:[%s1422_s2 + $0x38] sm:$0xff]  ;;  %v389_v20 = vld [vmem:[#allocation3] sm:$0xff] }
  0x39   : > { %1037 = vmatprep.subr.bf16.mxu1 %v1212_v3  ;;  %1046 = vmatprep.subr.bf16.mxu0 %v1212_v3  ;;  %v1041_v16 = vpack.c.bf16 %v386_v15, %v385_v14  ;;  %v1044_v19 = vpack.c.bf16 %v388_v18, %v387_v17  ;;  %v263_v21 = vld [vmem:[%s1305_s19 + $0x10] sm:$0xff]  ;;  %v264_v22 = vld [vmem:[%s1305_s19 + $0x18] sm:$0xff]  ;;  %v855_v23 = vld [vmem:[%s1423_s3] ss:$0 sm:$0xff] }
  0x3a   : > { %v699_v52 = vld [vmem:[#allocation4] sm:$0xff] (!%p865_p4)  ;;  %v700_v53 = vld [vmem:[#allocation4 + $0x8] sm:$0xff] (!%p865_p4)  ;;  %v701_v54 = vld [vmem:[#allocation4 + $0x10] sm:$0xff] (!%p865_p4) }
  0x3b   : > { %928 = vmatmul.mubr.msk.f32.vlgmr.msra.gmra.mrb[0].mxu0 %vm274_vm4, %v262_v12  ;;  %v1083_v56 = vpack.c.bf16 (!%p865_p4), %v700_v53, %v699_v52  ;;  %v702_v57 = vld [vmem:[#allocation4 + $0x18] sm:$0xff] (!%p865_p4)  ;;  %v703_v60 = vld [vmem:[#allocation4 + $0x20] sm:$0xff] (!%p865_p4)  ;;  %v704_v61 = vld [vmem:[#allocation4 + $0x28] sm:$0xff] (!%p865_p4) }
  0x3c   : > { %1039 = vmatpush3.bf16.msra.mxu1 %v1038_v13  ;;  %1048 = vmatpush3.bf16.msra.mxu0 %v1322_v7  ;;  %v1086_v59 = vpack.c.bf16 (!%p865_p4), %v702_v57, %v701_v54  ;;  %v1089_v62 = vpack.c.bf16 (!%p865_p4), %v704_v61, %v703_v60  ;;  %v705_v63 = vld [vmem:[#allocation4 + $0x30] sm:$0xff] (!%p865_p4)  ;;  %v706_v0 = vld [vmem:[#allocation4 + $0x38] sm:$0xff] (!%p865_p4) }
  0x3d   : > { %1040 = vmatprep.subr.bf16.mxu1 %v1212_v3  ;;  %1049 = vmatprep.subr.bf16.mxu0 %v1212_v3  ;;  %v1092_v1 = vpack.c.bf16 (!%p865_p4), %v706_v0, %v705_v63  ;;  %v866_v2 = vld [vmem:[%s1425_s5] ss:$0 sm:$0xff] (!%p865_p4) }
  0x3e   : > { %930 = vmatprep.mubr.msk.f32.mxu0 %vm274_vm4, %v263_v21 }
  0x3f   : > { %931 = vmatmul.mubr.msk.f32.gmra.mrb[2].mxu0 %vm274_vm4, %v264_v22 }
  0x40   : > { %1042 = vmatpush3.bf16.msra.mxu1 %v1041_v16  ;;  %1051 = vmatpush3.bf16.msra.mxu0 %v1038_v13 }
  0x41   : > { %1043 = vmatprep.subr.bf16.mxu1 %v1212_v3  ;;  %1052 = vmatprep.subr.bf16.mxu0 %v1212_v3 }
  0x42   : > { %968 = vmatprep.mubr.msk.f32.mxu0 %vm1214_vm5, %v1215_v10 }
  0x44   : > { %1045 = vmatpush3.bf16.msra.mxu1 %v1044_v19  ;;  %1054 = vmatpush3.bf16.msra.mxu0 %v1041_v16 }
  0x45   : > { %1055 = vmatprep.subr.bf16.mxu0 %v1212_v3  ;;  %1058 = vmatprep.subr.bf16.mxu1 %v1212_v3 }
  0x47   : > { %950 = vmatmul.mubr.msk.f32.vlgmr.msra.gmra.mrb[0].mxu1 %vm376_vm6, %v389_v20 }
  0x48   : > { %1057 = vmatpush3.bf16.msra.mxu0 %v1044_v19  ;;  %1060 = vmatpush3.bf16.msra.mxu1 %v1322_v7 }
  0x49   : > { %1061 = vmatprep.subr.bf16.mxu1 %v1212_v3  ;;  %987 = vmatprep.mubr.msk.f32.mxu1 %vm1214_vm5, %v1215_v10 }
  0x4a   : > { %1070 = vmatprep.subr.bf16.mxu0 %v1212_v3 }
  0x4c   : > { %1063 = vmatpush3.bf16.msra.mxu1 %v1038_v13 }
  0x4d   : > { %1064 = vmatprep.subr.bf16.mxu1 %v1212_v3 }
  0x50   : > { %1066 = vmatpush3.bf16.msra.mxu1 %v1041_v16 }
  0x51   : > { %1067 = vmatprep.subr.bf16.mxu1 %v1212_v3 }
  0x54   : > { %1069 = vmatpush3.bf16.msra.mxu1 %v1044_v19 }
 0x10e   : > { %v929_v24 = vpop.f32.mrb[0].mxu0 }
 0x10f   : > { %v363_v25 = vadd.f32 %v929_v24, %v855_v23  ;;  %v357_v26 = vpop.f32.mrb[1].mxu0 }
 0x110   : > { %v358_v27 = vadd.f32 %v855_v23, %v357_v26 }
 0x111   : > { %378 = vst.msk [vmem:[#allocation2 + $0x8] sm:$0xff] %vm376_vm6, %v363_v25 }
 0x112   : > { %377 = vst.msk [vmem:[#allocation2] sm:$0xff] %vm376_vm6, %v358_v27  ;;  %v932_v33 = vpop.f32.mrb[2].mxu0 }
 0x113   : > { %v373_v34 = vadd.f32 %v932_v33, %v855_v23  ;;  %v367_v35 = vpop.f32.mrb[3].mxu0 }
 0x114   : > { %v368_v36 = vadd.f32 %v855_v23, %v367_v35 }
 0x115   : > { %380 = vst.msk [vmem:[#allocation2 + $0x18] sm:$0xff] %vm376_vm6, %v373_v34 }
 0x116   : > { %379 = vst.msk [vmem:[#allocation2 + $0x10] sm:$0xff] %vm376_vm6, %v368_v36 }
 0x118   : > { %v466_v37 = vld [vmem:[#allocation2 + $0x8] sm:$0xff] }
 0x119   : > { %v390_v28 = vld [vmem:[#allocation2] sm:$0xff] }
 0x11a   : > { %v460_v29 = vpop.f32.mrb[0].mxu1 }
 0x11b   : > { %v464_v30 = vadd.f32 %v460_v29, %v390_v28  ;;  %v951_v31 = vpop.f32.mrb[1].mxu1 }
 0x11c   : > { %v618_v47 = vld [vmem:[#allocation2 + $0x18] sm:$0xff] }
 0x11d   : > { %1130 = vtanh.f32 %v464_v30  ;;  %v542_v42 = vld [vmem:[#allocation2 + $0x10] sm:$0xff] }
 0x127   : > { %v1131_v32 = vpop.eup %1130 }
 0x128   : > { %969 = vmatmul.mubr.msk.f32.vlgmr.msra.gmra.mrb[4].mxu0 %vm376_vm6, %v1131_v32 }
 0x129   : > { %1072 = vmatpush3.bf16.msra.mxu0 %v1322_v7  ;;  %1006 = vmatprep.mubr.msk.f32.mxu0 %vm1214_vm5, %v1215_v10 }
 0x12a   : > { %1073 = vmatprep.subr.bf16.mxu0 %v1212_v3 }
 0x12d   : > { %1075 = vmatpush3.bf16.msra.mxu0 %v1038_v13 }
 0x12e   : > { %1076 = vmatprep.subr.bf16.mxu0 %v1212_v3 }
 0x131   : > { %1078 = vmatpush3.bf16.msra.mxu0 %v1041_v16 }
 0x132   : > { %1079 = vmatprep.subr.bf16.mxu0 %v1212_v3 }
 0x135   : > { %1081 = vmatpush3.bf16.msra.mxu0 %v1044_v19 }
 0x136   : > { %1082 = vmatprep.subr.bf16.mxu0 (!%p865_p4), %v1216_v55 }
 0x1fb   : > { %v536_v38 = vpop.f32.mrb[4].mxu0 }
 0x1fc   : > { %v540_v39 = vadd.f32 %v536_v38, %v466_v37  ;;  %v970_v40 = vpop.f32.mrb[5].mxu0 }
 0x1fe   : > { %1132 = vtanh.f32 %v540_v39 }
 0x208   : > { %v1133_v41 = vpop.eup %1132 }
 0x209   : > { %988 = vmatmul.mubr.msk.f32.vlgmr.msra.gmra.mrb[2].mxu1 %vm376_vm6, %v1133_v41 }
 0x2dc   : > { %v612_v43 = vpop.f32.mrb[2].mxu1 }
 0x2dd   : > { %v616_v44 = vadd.f32 %v612_v43, %v542_v42  ;;  %v989_v45 = vpop.f32.mrb[3].mxu1 }
 0x2df   : > { %1134 = vtanh.f32 %v616_v44 }
 0x2e9   : > { %v1135_v46 = vpop.eup %1134 }
 0x2ea   : > { %1007 = vmatmul.mubr.msk.f32.vlgmr.msra.gmra.mrb[6].mxu0 %vm376_vm6, %v1135_v46 }
 0x2eb   : > { %1025 = vmatprep.mubr.msk.f32.mxu0 (!%p865_p4), %vm1217_vm7, %v1218_v58  ;;  %1084 = vmatpush3.bf16.msra.mxu0 (!%p865_p4), %v1083_v56 }
 0x2ec   : > { %1085 = vmatprep.subr.bf16.mxu0 (!%p865_p4), %v1216_v55 }
 0x2ef   : > { %1087 = vmatpush3.bf16.msra.mxu0 (!%p865_p4), %v1086_v59 }
 0x2f0   : > { %1088 = vmatprep.subr.bf16.mxu0 (!%p865_p4), %v1216_v55 }
 0x2f3   : > { %1090 = vmatpush3.bf16.msra.mxu0 (!%p865_p4), %v1089_v62 }
 0x2f4   : > { %1091 = vmatprep.subr.bf16.mxu0 (!%p865_p4), %v1216_v55 }
 0x2f7   : > { %1093 = vmatpush3.bf16.msra.mxu0 (!%p865_p4), %v1092_v1 }
 0x3bd   : > { %v688_v48 = vpop.f32.mrb[6].mxu0 }
 0x3be   : > { %v692_v49 = vadd.f32 %v688_v48, %v618_v47  ;;  %v1008_v50 = vpop.f32.mrb[7].mxu0 }
 0x3c0   : > { %1136 = vtanh.f32 %v692_v49 }
 0x3c5   : > { %698 = sbr.rel (%p865_p4) target bundleno = 1186 (0x4a2), region = 56 }
 0x3ca   : > { %v1137_v51 = vpop.eup %1136 }
 0x3cb   : > { %694 = vst.msk [vmem:[#allocation3] sm:$0xff] %vm376_vm6, %v1137_v51  ;;  %1026 = vmatmul.mubr.msk.f32.vlgmr.msra.gmra.mrb[0].mxu0 (!%p865_p4), %vm376_vm6, %v1137_v51 }
 0x49e   : > { %v783_v3 = vpop.f32.mrb[0].mxu0 }
 0x49f   : > { %v784_v4 = vadd.f32 %v866_v2, %v783_v3  ;;  %v1027_v5 = vpop.f32.mrb[1].mxu0 }
 0x4a1   : > { %787 = vst [vmem:[#allocation7] sm:$0xff] %v784_v4 }
 0x4a2 PF: > { %p1108_p6 = scmp.eq.s32.totalorder %s1261_s22, 1  ;;  %s1219_s24 = smov [#allocation7]  }
 0x4a3   : > { %s795_s25 = sshll.u32 %s1219_s24, 4  ;;  %s796_s25 = int_to_ptr.vmem [resolvable:$true] %s795_s25 }
 0x4a4   : > { %s1166_s26 = scalar_lea.vmem %s796_s25, 128  ;;  %p1173_p13 = scmp.lt.s32.totalorder %s796_s25, %s796_s25 }
 0x4a5   : > { %p1167_p10 = scmp.ne.s32.totalorder %s796_s25, %s1166_s26  ;;  %p1174_p0 = scmp.lt.s32.totalorder %s1166_s26, %s1166_s26 }
 0x4a7   : > { %p1168_p11 = pnand %p1167_p10, %p1108_p6  ;;  %p1175_p1 = por %p1174_p0, %p1173_p13 }
 0x4a9   : > { %p1169_p12 = pneg %p1168_p11 }
 0x4ab   : > { %p1176_p5 = pnand %p1175_p1, %p1169_p12 }
 0x4ad   : > { %1179 = shalt.err (!%p1176_p5)
}
 0x4ae   : > { %s1180_s29 = scalar_lea.hbm %s1426_s6, 128 }
 0x4af   : > { %p1181_p7 = scmp.ne.s32.totalorder %s1426_s6, %s1180_s29  ;;  %p1186_p2 = scmp.lt.u32.totalorder %s1180_s29, %s1426_s6 }
 0x4b1   : > { %p1182_p9 = pnand %p1181_p7, %p1108_p6 }
 0x4b3   : > { %p1183_p8 = pneg %p1182_p9 }
 0x4b5   : > { %p1188_p3 = pnand %p1186_p2, %p1183_p8 }
 0x4b7   : > { %1191 = shalt.err (!%p1188_p3)
}
 0x4b8   : > { %1099 = dma.vmem_to_hbm [thread:$0]  (%p1108_p6), %s796_s25, 128, %s1426_s6, [#allocation6]  }
 0x4b9   : > { %1201 = dma.done.wait (%p1108_p6), [#allocation6], 128  }
 0x4ba   : > { %1203 = vsyncadd (%p1108_p6), [#allocation6], 4294967168 }
 0x4bb PF: > { %s18_s21 = sadd.s32 1, %s1206_s21  }
 0x4bc   : > { %p15_p4 = scmp.ge.s32.totalorder %s18_s21, 4  }
 0x4be   :  { %17 = sbr.rel (!%p15_p4) target bundleno = 2 (0x2), region = 84 }
 0x4c5   :  { %808 = vsyncpa [#allocation5], 1 }
 0x4c6   :  { %810 = vsyncpa [#allocation5 + $0x1], 1 }
 0x4c7   :  { %811 = vsyncpa [#allocation6], 1 }
 0x4c8   :  { %813 = vsyncpa [#allocation6 + $0x1], 1 }

</bundles_post_ra>
